<compile_context>
chip_gen: v7x
topology: tpu7x:2x2x1
jax: 0.10.0
libtpu: 0.0.40
codegen_flags: <defaults>
</compile_context>

<pallas_src>
import functools
import numpy as np
import jax
import jax.numpy as jnp
from jax.experimental import pallas as pl
from jax.experimental.pallas import tpu as pltpu


def _make_keypoint_weights() -> jnp.ndarray:
    """Deterministic re-creation of the `weights` buffer from __init__ (shape (68,))."""
    w = np.ones(68, dtype=np.float32)
    w[5:7] = 2.0
    w[10:12] = 2.0
    w[27:36] = 1.5
    w[30] = 3.0
    w[31] = 3.0
    w[35] = 3.0
    w[60:68] = 1.5
    w[48:60] = 1.5
    w[48] = 3.0
    w[54] = 3.0
    return jnp.asarray(w)


def _round_up(x: int, m: int) -> int:
    return (x + m - 1) // m * m


def _keypoint_loss_kernel(pred_ref, gt_ref, w_ref, out_ref, acc_ref, *,
                          total_rows, tiles_per_core, tile_rows, needs_mask):
    # pred_ref, gt_ref: (TB, D) f32 VMEM tiles (batch tile, flattened kp*xy)
    # w_ref:            (1, D)  f32 VMEM (all normalization pre-folded)
    # out_ref:          (1, 8, D) f32 VMEM per-core weighted partial sum
    # acc_ref:          (8, D) f32 VMEM scratch accumulator (unweighted)
    c = pl.program_id(0)   # core / parallel axis
    i = pl.program_id(1)   # streaming reduction axis

    @pl.when(i == 0)
    def _():
        acc_ref[...] = jnp.zeros_like(acc_ref)

    # Pure VPU streaming work per step (hidden under the DMA).
    d = jnp.abs(pred_ref[...] - gt_ref[...])                      # (TB, D)

    if needs_mask:
        # Zero out rows beyond the real batch (edge tile / surplus tiles).
        tile = c * tiles_per_core + i
        row_ids = tile * tile_rows + jax.lax.broadcasted_iota(
            jnp.int32, (tile_rows, 1), 0)
        d = jnp.where(row_ids < total_rows, d, jnp.float32(0.0))

    # Fold TB rows to 8 sublanes with elementwise adds only (no per-step XLU).
    acc_ref[...] += jnp.sum(d.reshape(tile_rows // 8, 8, d.shape[-1]), axis=0)

    # Apply weights once, on the last streaming step; write per-core partial.
    @pl.when(i == pl.num_programs(1) - 1)
    def _():
        out_ref[0] = acc_ref[...] * w_ref[...]


def keypoint_loss_all_pallas(pred_lmk, gt_lmk, weights, *,
                             tb_cap: int = 2048, num_cores: int = 2):
    """pred_lmk, gt_lmk: (B, 68, 2) detector landmarks. Returns scalar weighted-L1 loss."""
    B, N, C = pred_lmk.shape
    D = N * C  # 136: lane-dense axis (keypoint-major, xy interleaved)

    # Fold weight normalization, the mean over (x, y) and the batch mean into
    # one host-side constant vector, interleaved to match the (N, C) flatten.
    w = weights.astype(jnp.float32)
    w_norm = w / (jnp.sum(w) * jnp.float32(C) * jnp.float32(B))
    w_flat = jnp.repeat(w_norm, C).reshape(1, D)                  # (1, 136)

    # Native layout, no transposes: contiguous (free) reshape to (B, 136).
    pred_flat = pred_lmk.astype(jnp.float32).reshape(B, D)
    gt_flat = gt_lmk.astype(jnp.float32).reshape(B, D)

    # Batch tile: multiple of 8 sublanes, capped by the VMEM budget.
    TB = min(_round_up(tb_cap, 8), _round_up(B, 8))
    assert TB % 8 == 0
    nb = (B + TB - 1) // TB                     # real tiles
    npc = (nb + num_cores - 1) // num_cores     # tiles per core
    total_tiles = num_cores * npc
    needs_mask = (total_tiles * TB) != B        # edge tile / surplus tiles

    if total_tiles == nb:
        in_map = lambda c, i: (c * npc + i, 0)
    else:
        # Surplus tiles re-read the last real tile; their rows are masked out.
        in_map = lambda c, i: (jnp.minimum(c * npc + i, nb - 1), 0)

    kernel = functools.partial(
        _keypoint_loss_kernel,
        total_rows=B, tiles_per_core=npc, tile_rows=TB, needs_mask=needs_mask)

    out = pl.pallas_call(
        kernel,
        out_shape=jax.ShapeDtypeStruct((num_cores, 8, D), jnp.float32),
        grid_spec=pltpu.PrefetchScalarGridSpec(
            num_scalar_prefetch=0,
            grid=(num_cores, npc),
            in_specs=[
                pl.BlockSpec((TB, D), in_map),
                pl.BlockSpec((TB, D), in_map),
                pl.BlockSpec((1, D), lambda c, i: (0, 0)),
            ],
            out_specs=pl.BlockSpec((1, 8, D), lambda c, i: (c, 0, 0)),
            scratch_shapes=[pltpu.VMEM((8, D), jnp.float32)],
        ),
        compiler_params=pltpu.CompilerParams(
            dimension_semantics=("parallel", "arbitrary"),
            # TB=2048 needs ~8.5 MiB (136->256 lane padding, double-buffered);
            # 32 MiB covers v5e's 16 MiB default and is safe on v6e/v7x.
            vmem_limit_bytes=32 * 1024 * 1024),
    )(pred_flat, gt_flat, w_flat)

    # Tiny epilogue: sum the per-core (8, D) weighted partials.
    return jnp.sum(out)


def keypoint_loss_all_ref(pred_lmk, gt_lmk, weights):
    """Pure-JAX reference mirroring the PyTorch mode='all' branch."""
    diff = jnp.abs(pred_lmk - gt_lmk).mean(-1)            # (B, 68)
    loss = diff * weights[None] / weights.sum()            # (B, 68)
    return loss.sum(-1).mean()


def keypoint_loss_all(pred_lmk, gt_lmk, weights, *, use_pallas=None):
    """Dispatcher: tiny batches are faster as a fused XLA expression."""
    if use_pallas is None:
        use_pallas = pred_lmk.shape[0] >= 256
    if not use_pallas:
        return keypoint_loss_all_ref(pred_lmk, gt_lmk, weights)
    return keypoint_loss_all_pallas(pred_lmk, gt_lmk, weights)


if __name__ == "__main__":
    key = jax.random.PRNGKey(0)
    k1, k2, k3, k4 = jax.random.split(key, 4)
    weights = _make_keypoint_weights()

    B, N, C = 2, 68, 2   # batch, 68 facial keypoints, (x, y) coordinates
    # Synthetic landmark detector outputs (what DECAKeypoints would produce).
    pred_lmk = jax.random.uniform(k1, (B, N, C), dtype=jnp.float32)
    gt_lmk = jax.random.uniform(k2, (B, N, C), dtype=jnp.float32)

    loss = jax.block_until_ready(keypoint_loss_all_pallas(pred_lmk, gt_lmk, weights))
    loss_ref = keypoint_loss_all_ref(pred_lmk, gt_lmk, weights)
    assert jnp.allclose(loss, loss_ref, rtol=1e-5, atol=1e-6), (loss, loss_ref)

    # Second check at a small, awkward batch to exercise multi-tile streaming,
    # in-kernel edge masking, tile-index clamping and both grid "cores".
    B2 = 37
    pred2 = jax.random.uniform(k3, (B2, N, C), dtype=jnp.float32)
    gt2 = jax.random.uniform(k4, (B2, N, C), dtype=jnp.float32)
    loss2 = jax.block_until_ready(
        keypoint_loss_all_pallas(pred2, gt2, weights, tb_cap=16))
    loss2_ref = keypoint_loss_all_ref(pred2, gt2, weights)
    assert jnp.allclose(loss2, loss2_ref, rtol=1e-5, atol=1e-6), (loss2, loss2_ref)

    print("KERNEL_OK")
</pallas_src>

<mosaic_0001>
module attributes {stable_mosaic.version = 11 : i64} {
  func.func @_keypoint_loss_kernel(%arg0: i32, %arg1: i32, %arg2: memref<8x136xf32, #tpu.memory_space<vmem>>, %arg3: memref<8x136xf32, #tpu.memory_space<vmem>>, %arg4: memref<1x136xf32, #tpu.memory_space<vmem>>, %arg5: memref<1x8x136xf32, #tpu.memory_space<vmem>>, %arg6: memref<8x136xf32, #tpu.memory_space<vmem>>) attributes {dimension_semantics = [#tpu.dimension_semantics<parallel>, #tpu.dimension_semantics<arbitrary>], iteration_bounds = array<i64: 2, 1>, scalar_prefetch = 0 : i64, scratch_operands = 1 : i64, tpu.core_type = #tpu.core_type<tc>, window_params = [{transform_indices = @transform_0, window_bounds = array<i64: 8, 136>}, {transform_indices = @transform_1, window_bounds = array<i64: 8, 136>}, {pipeline_mode = #tpu.pipeline_mode<synchronous>, transform_indices = @transform_2, window_bounds = array<i64: 1, 136>}, {transform_indices = @transform_3, window_bounds = array<i64: 1, 8, 136>}]} {
    %c0_i32 = arith.constant 0 : i32
    %0 = arith.cmpi eq, %arg1, %c0_i32 : i32
    %1 = arith.extui %0 : i1 to i32
    %c0_i32_0 = arith.constant 0 : i32
    %2 = arith.cmpi ne, %1, %c0_i32_0 : i32
    scf.if %2 {
      %cst_11 = arith.constant 0.000000e+00 : f32
      %27 = vector.broadcast %cst_11 : f32 to vector<8x136xf32>
      %c0_12 = arith.constant 0 : index
      %c0_13 = arith.constant 0 : index
      %28 = vector.load %arg6[%c0_12, %c0_13] : memref<8x136xf32, #tpu.memory_space<vmem>>, vector<8x136xf32>
      tpu.vector_store %arg6[%c0_12, %c0_13], %27 {strides = array<i32>} : memref<8x136xf32, #tpu.memory_space<vmem>>, vector<8x136xf32>,
    } else {
    }
    %c0 = arith.constant 0 : index
    %c0_1 = arith.constant 0 : index
    %3 = vector.load %arg2[%c0, %c0_1] : memref<8x136xf32, #tpu.memory_space<vmem>>, vector<8x136xf32>
    %c0_2 = arith.constant 0 : index
    %c0_3 = arith.constant 0 : index
    %4 = vector.load %arg3[%c0_2, %c0_3] : memref<8x136xf32, #tpu.memory_space<vmem>>, vector<8x136xf32>
    %5 = arith.subf %3, %4 : vector<8x136xf32>
    %6 = math.absf %5 : vector<8x136xf32>
    %c1_i32 = arith.constant 1 : i32
    %7 = arith.muli %arg0, %c1_i32 : i32
    %8 = arith.addi %7, %arg1 : i32
    %c8_i32 = arith.constant 8 : i32
    %9 = arith.muli %8, %c8_i32 : i32
    %10 = tpu.iota {dimensions = array<i32: 0>} : vector<8x1xi32>
    %11 = vector.broadcast %9 : i32 to vector<8x1xi32>
    %12 = arith.addi %11, %10 : vector<8x1xi32>
    %c2_i32 = arith.constant 2 : i32
    %13 = vector.broadcast %c2_i32 : i32 to vector<8x1xi32>
    %14 = arith.cmpi slt, %12, %13 : vector<8x1xi32>
    %cst = arith.constant 0.000000e+00 : f32
    %15 = vector.shape_cast %14 : vector<8x1xi1> to vector<8x1xi1>
    %16 = vector.broadcast %15 : vector<8x1xi1> to vector<8x136xi1>
    %17 = vector.broadcast %cst : f32 to vector<8x136xf32>
    %18 = arith.select %16, %6, %17 : vector<8x136xi1>, vector<8x136xf32>
    %c0_4 = arith.constant 0 : index
    %c0_5 = arith.constant 0 : index
    %19 = vector.load %arg6[%c0_4, %c0_5] : memref<8x136xf32, #tpu.memory_space<vmem>>, vector<8x136xf32>
    %20 = vector.shape_cast %18 : vector<8x136xf32> to vector<1x8x136xf32>
    %cst_6 = arith.constant dense<0.000000e+00> : vector<8x136xf32>
    %21 = vector.multi_reduction <add>, %20, %cst_6 [0] : vector<1x8x136xf32> to vector<8x136xf32>
    %22 = arith.addf %19, %21 : vector<8x136xf32>
    %c0_7 = arith.constant 0 : index
    %c0_8 = arith.constant 0 : index
    %23 = vector.load %arg6[%c0_7, %c0_8] : memref<8x136xf32, #tpu.memory_space<vmem>>, vector<8x136xf32>
    tpu.vector_store %arg6[%c0_7, %c0_8], %22 {strides = array<i32>} : memref<8x136xf32, #tpu.memory_space<vmem>>, vector<8x136xf32>,
    %c0_i32_9 = arith.constant 0 : i32
    %24 = arith.cmpi eq, %arg1, %c0_i32_9 : i32
    %25 = arith.extui %24 : i1 to i32
    %c0_i32_10 = arith.constant 0 : i32
    %26 = arith.cmpi ne, %25, %c0_i32_10 : i32
    scf.if %26 {
      %c0_11 = arith.constant 0 : index
      %c0_12 = arith.constant 0 : index
      %27 = vector.load %arg6[%c0_11, %c0_12] : memref<8x136xf32, #tpu.memory_space<vmem>>, vector<8x136xf32>
      %c0_13 = arith.constant 0 : index
      %c0_14 = arith.constant 0 : index
      %28 = vector.load %arg4[%c0_13, %c0_14] : memref<1x136xf32, #tpu.memory_space<vmem>>, vector<1x136xf32>
      %29 = vector.broadcast %28 : vector<1x136xf32> to vector<8x136xf32>
      %30 = arith.mulf %27, %29 : vector<8x136xf32>
      %c0_15 = arith.constant 0 : index
      %c0_16 = arith.constant 0 : index
      %c0_17 = arith.constant 0 : index
      %31 = vector.load %arg5[%c0_15, %c0_16, %c0_17] : memref<1x8x136xf32, #tpu.memory_space<vmem>>, vector<1x8x136xf32>
      %32 = vector.shape_cast %31 : vector<1x8x136xf32> to vector<8x136xf32>
      %33 = vector.shape_cast %30 : vector<8x136xf32> to vector<1x8x136xf32>
      tpu.vector_store %arg5[%c0_15, %c0_16, %c0_17], %33 {strides = array<i32>} : memref<1x8x136xf32, #tpu.memory_space<vmem>>, vector<1x8x136xf32>,
    } else {
    }
    return
  }
  func.func @transform_0(%arg0: i32, %arg1: i32) -> (i32, i32) {
    %c1_i32 = arith.constant 1 : i32
    %0 = arith.muli %arg0, %c1_i32 : i32
    %1 = arith.addi %0, %arg1 : i32
    %c0_i32 = arith.constant 0 : i32
    %2 = arith.minsi %1, %c0_i32 : i32
    %c0_i32_0 = arith.constant 0 : i32
    %c0_i32_1 = arith.constant 0 : i32
    return %2, %c0_i32_0 : i32, i32
  }
  func.func @transform_1(%arg0: i32, %arg1: i32) -> (i32, i32) {
    %c1_i32 = arith.constant 1 : i32
    %0 = arith.muli %arg0, %c1_i32 : i32
    %1 = arith.addi %0, %arg1 : i32
    %c0_i32 = arith.constant 0 : i32
    %2 = arith.minsi %1, %c0_i32 : i32
    %c0_i32_0 = arith.constant 0 : i32
    %c0_i32_1 = arith.constant 0 : i32
    return %2, %c0_i32_0 : i32, i32
  }
  func.func @transform_2(%arg0: i32, %arg1: i32) -> (i32, i32) {
    %c0_i32 = arith.constant 0 : i32
    %c0_i32_0 = arith.constant 0 : i32
    %c0_i32_1 = arith.constant 0 : i32
    return %c0_i32, %c0_i32_0 : i32, i32
  }
  func.func @transform_3(%arg0: i32, %arg1: i32) -> (i32, i32, i32) {
    %c0_i32 = arith.constant 0 : i32
    %c0_i32_0 = arith.constant 0 : i32
    %c0_i32_1 = arith.constant 0 : i32
    return %arg0, %c0_i32, %c0_i32_0 : i32, i32, i32
  }
}

</mosaic_0001>

<bundles_post_ra>
// kernel: tpu_custom_call.1
= control target key start
LH: loop header
LB: loop body
LE: loop exit
PB: predicated region body
PF: predicated region fallthrough
CT: control target
= control target key end

     0   :  { %8 = vsyncpa [#allocation4], 0  ;;  %s992_s0 = inlined_call_operand.hbm [shape: f32[2,136], index: 0, kind: input, shape index: {}]   ;;  %s993_s1 = inlined_call_operand.hbm [shape: f32[2,136], index: 1, kind: input, shape index: {}]   ;;  %s994_s2 = inlined_call_operand.vmem [shape: f32[1,136], index: 2, kind: input, shape index: {}]   ;;  %s995_s3 = inlined_call_operand.hbm [shape: f32[2,8,136], index: 3, kind: output, shape index: {}]  }
   0x1   :  { %10 = vsyncpa [#allocation4 + $0x1], 0 }
   0x2   :  { %11 = vsyncpa [#allocation7], 0 }
   0x3   :  { %13 = vsyncpa [#allocation7 + $0x1], 0 }
   0x4   :  { %14 = vsyncpa [#allocation5], 0 }
   0x5   :  { %16 = vsyncpa [#allocation5 + $0x1], 0  ;;  %s813_s12 = smov 0   ;;  %s815_s13 = smov 0  }
   0x6   :  { %s817_s14 = smov 0   ;;  %s819_s15 = smov 0  }
   0x7   :  { %s821_s16 = smov 0   ;;  %s823_s17 = smov 0  }
   0x8   :  { %s825_s18 = smov 0   ;;  %s827_s19 = smov 0  }
   0x9 LB: > { %s489_s20 = sadd.s32 4294967295, %s782_s19   ;;  %s490_s21 = sadd.s32 4294967294, %s782_s19   ;;  %s782_s19 = sphi %s827_s19, %s22_s19   ;;  %s778_s18 = sphi %s825_s18, %s1007_s18   ;;  %s774_s17 = sphi %s823_s17, %s1006_s17   ;;  %s770_s16 = sphi %s821_s16, %s982_s16   ;;  %s766_s15 = sphi %s819_s15, %s1005_s15   ;;  %s762_s14 = sphi %s817_s14, %s1004_s14   ;;  %s758_s13 = sphi %s815_s13, %s1003_s13   ;;  %s754_s12 = sphi %s813_s12, %s1002_s12  }
   0xa   : > { %s34_s22 = sadd.s32 1, %s778_s18  ;;  %p751_p1 = scmp.ne.s32.totalorder %s770_s16, 0 }
   0xb   : > { %p36_p0 = scmp.ge.s32.totalorder %s34_s22, 2  ;;  %p55_p2 = scmp.eq.s32.totalorder %s782_s19, 0 }
   0xc   : > { %p60_p3 = scmp.ne.s32.totalorder %s770_s16, %s766_s15  ;;  %p61_p5 = scmp.eq.s32.totalorder %s489_s20, 0 }
   0xd   : > { %s1009_s22 = smov (%p36_p0, %s34_s22), 0  ;;  %p859_p4 = por %p751_p1, %p55_p2 }
   0xe   : > { %p863_p6 = por %p61_p5, %p60_p3  ;;  %s123_s25 = ssub.s32 %s778_s18, %s1009_s22 }
   0xf   : > { %p124_p7 = scmp.eq.s32.totalorder %s123_s25, 0  ;;  %s126_s26 = sadd.s32 1, %s762_s14 }
  0x10   : > { %p136_p8 = scmp.ne.s32.totalorder %s762_s14, %s758_s13  ;;  %p137_p9 = scmp.eq.s32.totalorder %s489_s20, 1 }
  0x11   : > { %s871_s27 = scalar_select %p124_p7, %s762_s14, %s126_s26  }
  0x12   : > { %p142_p10 = scmp.ne.s32.totalorder %s758_s13, %s754_s12  ;;  %p143_p11 = scmp.eq.s32.totalorder %s490_s21, 1 }
  0x13   : > { %p877_p12 = por %p137_p9, %p136_p8  ;;  %p996_p0 = scmp.ge.s32.totalorder %s782_s19, 2 }
  0x14   : > { %p881_p13 = por %p143_p11, %p142_p10 }
  0x15   : > { %162 = sbr.rel (%p996_p0) target bundleno = 82 (0x52), region = 20 }
  0x1c   : > { %165 = sbr.rel (!%p859_p4) target bundleno = 55 (0x37), region = 24 }
  0x23   : > { %180 = vsyncadd [#allocation4], 192  ;;  %s784_s30 = smov [#allocation3]   ;;  %s615_s7 = scalar_lea.hbm %s992_s0, 64 }
  0x24   : > { %s186_s4 = sshll.u32 %s784_s30, 4  ;;  %p616_p1 = scmp.ne.s32.totalorder %s992_s0, %s615_s7  ;;  %s187_s4 = int_to_ptr.vmem [resolvable:$true] %s186_s4 }
  0x25   : > { %p621_p2 = scmp.lt.u32.totalorder %s615_s7, %s615_s7  ;;  %p623_p3 = scmp.lt.u32.totalorder %s615_s7, %s992_s0 }
  0x27   : > { %p624_p5 = por %p623_p3, %p621_p2 }
  0x29   : > { %p625_p7 = pnand %p624_p5, %p616_p1 }
  0x2b   : > { %628 = shalt.err (!%p625_p7)
}
  0x2c   : > { %s629_s15 = scalar_lea.vmem %s187_s4, 64  ;;  %s635_s20 = scalar_lea.vmem %s187_s4, 512 }
  0x2d   : > { %p630_p8 = scmp.ne.s32.totalorder %s187_s4, %s629_s15  ;;  %p636_p9 = scmp.lt.s32.totalorder %s187_s4, %s187_s4 }
  0x2e   : > { %p637_p10 = scmp.lt.s32.totalorder %s635_s20, %s629_s15 }
  0x30   : > { %p638_p11 = por %p637_p10, %p636_p9 }
  0x32   : > { %p639_p0 = pnand %p638_p11, %p630_p8 }
  0x34   : > { %642 = shalt.err (!%p639_p0)
}
  0x35   : > { %s785_s21 = smov 64   ;;  %s786_s25 = smov 4  }
  0x36   : > { %192 = dma.hbm_to_vmem [thread:$0]  %s992_s0, 64, %s187_s4, [#allocation4], %s785_s21, %s785_s21, %s786_s25  }
  0x37 PF: > { %195 = sbr.rel (!%p859_p4) target bundleno = 82 (0x52), region = 28 }
  0x3e   : > { %210 = vsyncadd [#allocation7], 192  ;;  %s787_s5 = smov [#allocation6]   ;;  %s643_s9 = scalar_lea.hbm %s993_s1, 64 }
  0x3f   : > { %s216_s6 = sshll.u32 %s787_s5, 4  ;;  %p644_p0 = scmp.ne.s32.totalorder %s993_s1, %s643_s9  ;;  %s217_s6 = int_to_ptr.vmem [resolvable:$true] %s216_s6 }
  0x40   : > { %p649_p1 = scmp.lt.u32.totalorder %s643_s9, %s643_s9  ;;  %p651_p2 = scmp.lt.u32.totalorder %s643_s9, %s993_s1 }
  0x42   : > { %p652_p3 = por %p651_p2, %p649_p1 }
  0x44   : > { %p653_p5 = pnand %p652_p3, %p644_p0 }
  0x46   : > { %656 = shalt.err (!%p653_p5)
}
  0x47   : > { %s657_s23 = scalar_lea.vmem %s217_s6, 64  ;;  %s663_s4 = scalar_lea.vmem %s217_s6, 512 }
  0x48   : > { %p658_p4 = scmp.ne.s32.totalorder %s217_s6, %s657_s23  ;;  %p664_p7 = scmp.lt.s32.totalorder %s217_s6, %s217_s6 }
  0x49   : > { %p665_p8 = scmp.lt.s32.totalorder %s663_s4, %s657_s23 }
  0x4b   : > { %p666_p9 = por %p665_p8, %p664_p7 }
  0x4d   : > { %p667_p10 = pnand %p666_p9, %p658_p4 }
  0x4f   : > { %670 = shalt.err (!%p667_p10)
}
  0x50   : > { %s788_s21 = smov 64   ;;  %s789_s25 = smov 4  }
  0x51   : > { %222 = dma.hbm_to_vmem [thread:$0]  %s993_s1, 64, %s217_s6, [#allocation7], %s788_s21, %s788_s21, %s789_s25  }
  0x52 PF: > { %p511_p11 = scmp.ge.s32.totalorder %s782_s19, 1  ;;  %p224_p0 = scmp.lt.s32.totalorder %s782_s19, 3 }
  0x54   : > { %p225_p1 = pnand %p511_p11, %p224_p0 }
  0x55   : > { %s230_s5 = sand.u32 (!%p225_p1), 1, %s770_s16  }
  0x56   : > { %228 = sbr.rel (%p225_p1) target bundleno = 138 (0x8a), region = 32  ;;  %s512_s7 = sshll.u32 (!%p225_p1), %s230_s5, 4 }
  0x57   : > { %s231_s8 = scalar_lea.sflag (!%p225_p1), [#allocation4], %s230_s5  ;;  %s234_s9 = scalar_lea.vmem (!%p225_p1), [#allocation3], %s512_s7 }
  0x5d   : > { %736 = dma.done.wait (%p863_p6), %s231_s8, 256  }
  0x5e   : > { %738 = vsyncadd (%p863_p6), %s231_s8, 4294967040  ;;  %s240_s6 = scalar_lea.sflag [#allocation7], %s230_s5  ;;  %s243_s10 = scalar_lea.vmem [#allocation6], %s512_s7 }
  0x5f   : > { %740 = dma.done.wait (%p863_p6), %s240_s6, 256  }
  0x60   : > { %742 = vsyncadd (%p863_p6), %s240_s6, 4294967040  ;;  %vm290_vm0 = vcmask 64512   ;;  %v790_v0 = vmov 0.0   ;;  %v310_v1 = vlaneseq  ;;  %v791_v2 = vmov 1983009808   ;;  %s515_s11 = sshll.u32 %s774_s17, 3 }
  0x61   : > { %291 = vst.msk [vmem:[#allocation2 + $0x8] sm:$0xff] %vm290_vm0, %v790_v0  ;;  %v324_v3 = vunpack.c.l.s4 %v791_v2  ;;  %v292_v5 = vld [vmem:[%s234_s9] sm:$0xf]  ;;  %v293_v6 = vld [vmem:[%s234_s9 + $0x4] sm:$0xf]  ;;  %v312_v18 = vstv %s515_s11  ;;  %s268_s24 = sand.u32 1, %s758_s13  }
  0x62   : > { %v311_v4 = vshrl.u32 %v310_v1, 7  ;;  %v294_v7 = vld [vmem:[%s234_s9 + $0x8] sm:$0xf]  ;;  %v295_v9 = vld [vmem:[%s234_s9 + $0xc] sm:$0xf]  ;;  %s514_s23 = sshll.u32 %s268_s24, 4 }
  0x63   : > { %v325_v8 = vunpack.c.0.s8 %v324_v3  ;;  %v296_v10 = vld [vmem:[%s243_s10] sm:$0xf]  ;;  %v297_v11 = vld [vmem:[%s243_s10 + $0x4] sm:$0xf]  ;;  %v298_v12 = vld [vmem:[%s243_s10 + $0x8] sm:$0xf] }
  0x64   : > { %v299_v13 = vld [vmem:[%s243_s10 + $0xc] sm:$0xf]  ;;  %v300_v14 = vsub.f32 %v292_v5, %v296_v10  ;;  %v301_v15 = vsub.f32 %v293_v6, %v297_v11  ;;  %v302_v16 = vsub.f32 %v294_v7, %v298_v12  ;;  %v313_v24 = vadd.s32 %v312_v18, %v311_v4  ;;  %v357_v30 = vld [vmem:[%s994_s2] sm:$0x3]  ;;  %s270_s4 = scalar_lea.vmem [#allocation8], %s514_s23  ;;  %s527_s25 = sshll.u32 %s774_s17, 8 }
  0x65   : > { %v303_v17 = vsub.f32 %v295_v9, %v299_v13  ;;  %v328_v21 = vsub.s32 %v325_v8, %v311_v4  ;;  %v361_v28 = vsub.s32 0, %v311_v4  ;;  %v365_v38 = vsub.s32 1, %v311_v4  ;;  %s388_s21 = sshll.u32 %s270_s4, 4  ;;  %s940_s5 = scalar_lea.hbm %s995_s3, %s527_s25  ;;  %s935_s21 = int_to_ptr.vmem [resolvable:$true] %s388_s21 }
  0x66   : > { %v304_v19 = vand.u32 2147483647, %v300_v14  ;;  %v305_v20 = vand.u32 2147483647, %v301_v15  ;;  %v306_v22 = vand.u32 2147483647, %v302_v16 }
  0x67   : > { %v307_v23 = vand.u32 2147483647, %v303_v17  ;;  %vm314_vm1 = vcmp.lt.s32.totalorder %v313_v24, 2  ;;  %v362_v34 = vrot.slane %v357_v30, %v361_v28  ;;  %v366_v40 = vrot.slane %v357_v30, %v365_v38  ;;  %s374_s7 = scalar_lea.sflag [#allocation5], %s268_s24  ;;  %s671_s8 = scalar_lea.vmem %s935_s21, 256 }
  0x68   : > { %v321_v25 = vcombine.low %v304_v19, %v305_v20  ;;  %v344_v33 = vld [vmem:[#allocation2 + $0x8] sm:$0xff]  ;;  %p672_p6 = scmp.ne.s32.totalorder %s935_s21, %s671_s8  ;;  %s792_s17 = smov [#allocation8]  }
  0x69   : > { %v322_v26 = vcombine.low %v306_v22, %v307_v23  ;;  %s675_s9 = sshll.u32 %s792_s17, 4  ;;  %s676_s9 = int_to_ptr.vmem [resolvable:$false] %s675_s9 }
  0x6a   : > { %v329_v27 = vrot.slane %v321_v25, %v328_v21  ;;  %p673_p2 = pnand %p672_p6, %p877_p12  ;;  %s677_s6 = scalar_lea.vmem %s676_s9, 512 }
  0x6b   : > { %v336_v29 = vrot.slane %v322_v26, %v328_v21  ;;  %p678_p5 = scmp.lt.s32.totalorder %s935_s21, %s676_s9  ;;  %p679_p4 = scmp.lt.s32.totalorder %s677_s6, %s671_s8 }
  0x6c   : > { %p674_p3 = pneg %p673_p2 }
  0x6d   : > { %v337_v31 = vcombine.low %v329_v27, %v336_v29  ;;  %v338_v32 = vcombine.high %v329_v27, %v336_v29  ;;  %p680_p7 = por %p679_p4, %p678_p5 }
  0x6f   : > { %v341_v35 = vsel %vm314_vm1, %v337_v31, 0.0  ;;  %v342_v36 = vsel %vm314_vm1, %v338_v32, 0.0  ;;  %p681_p8 = pnand %p680_p7, %p674_p3 }
  0x70   : > { %v348_v37 = vadd.f32 %v344_v33, %v342_v36  ;;  %v369_v39 = vmul.f32 %v362_v34, %v341_v35 }
  0x72   : > { %351 = vst.msk [vmem:[#allocation2 + $0x8] sm:$0xff] %vm290_vm0, %v348_v37  ;;  %371 = vst [vmem:[%s270_s4] sm:$0xff] %v369_v39 }
  0x79   : > { %v356_v41 = vld [vmem:[#allocation2 + $0x8] sm:$0xff] }
  0x7a   : > { %v370_v42 = vmul.f32 %v366_v40, %v356_v41 }
  0x7c   : > { %372 = vst.msk [vmem:[%s270_s4 + $0x8] sm:$0xff] %vm290_vm0, %v370_v42 }
  0x7d   : > { %684 = shalt.err (!%p681_p8)
}
  0x7e   : > { %s685_s10 = scalar_lea.hbm %s940_s5, 256  ;;  %s689_s15 = scalar_lea.hbm %s995_s3, 512 }
  0x7f   : > { %p686_p9 = scmp.ne.s32.totalorder %s940_s5, %s685_s10  ;;  %p690_p0 = scmp.lt.u32.totalorder %s940_s5, %s995_s3 }
  0x80   : > { %p691_p1 = scmp.lt.u32.totalorder %s689_s15, %s685_s10  ;;  %p693_p2 = scmp.lt.u32.totalorder %s685_s10, %s940_s5 }
  0x81   : > { %p687_p10 = pnand %p686_p9, %p877_p12 }
  0x82   : > { %p692_p6 = por %p691_p1, %p690_p0 }
  0x83   : > { %p688_p11 = pneg %p687_p10 }
  0x84   : > { %p694_p3 = por %p693_p2, %p692_p6 }
  0x86   : > { %p695_p5 = pnand %p694_p3, %p688_p11 }
  0x88   : > { %698 = shalt.err (!%p695_p5)
}
  0x89   : > { %530 = dma.vmem_to_hbm [thread:$0]  (%p877_p12), %s935_s21, 256, %s940_s5, %s374_s7  }
  0x8a PF: > { %s400_s4 = sand.u32 1, %s754_s12   ;;  %p1001_p4 = scmp.ge.s32.totalorder %s782_s19, 2 }
  0x8b   : > { %s401_s25 = scalar_lea.sflag [#allocation5], %s400_s4 }
  0x8c   : > { %p533_p7 = pnand %p1001_p4, %p881_p13 }
  0x8e   : > { %744 = dma.done.wait (!%p533_p7), %s401_s25, 256  }
  0x8f   : > { %746 = vsyncadd (!%p533_p7), %s401_s25, 4294967040  ;;  %s22_s19 = sadd.s32 1, %s782_s19   ;;  %s1002_s12 = smov %s758_s13 }
  0x90   : > { %p19_p8 = scmp.ge.s32.totalorder %s22_s19, 4   ;;  %s1003_s13 = smov %s762_s14 }
  0x91   : > { %s1004_s14 = smov %s871_s27  ;;  %s1005_s15 = smov %s770_s16 }
  0x92   : > { %s982_s16 = smov 0   ;;  %s1006_s17 = smov %s778_s18 }
  0x93   : > { %s1007_s18 = smov %s1009_s22  ;;  %21 = sbr.rel (!%p19_p8) target bundleno = 9 (0x9), region = 98 }
  0x9a   :  { %406 = vsyncpa [#allocation4], 1 }
  0x9b   :  { %408 = vsyncpa [#allocation4 + $0x1], 1 }
  0x9c   :  { %409 = vsyncpa [#allocation7], 1 }
  0x9d   :  { %411 = vsyncpa [#allocation7 + $0x1], 1 }
  0x9e   :  { %412 = vsyncpa [#allocation5], 1 }
  0x9f   :  { %414 = vsyncpa [#allocation5 + $0x1], 1 }

</bundles_post_ra>
